<compile_context>
chip_gen: v5e
topology: v5e:2x2
jax: 0.10.0
libtpu: 0.0.40
codegen_flags: <defaults>
</compile_context>

<pallas_src>
import functools

import jax
import jax.numpy as jnp
from jax.experimental import pallas as pl
from jax.experimental.pallas import tpu as pltpu

EPS = 1e-5
_VMEM_LIMIT = 48 * 1024 * 1024  # <= physical VMEM on v5e/v6e (128 MiB) and v7x (64 MiB/TC)


# ------------------------------ small helpers -------------------------------

def _round_up(v, m):
    return (v + m - 1) // m * m


def _pick_rows(m, target=2048):
    """Largest multiple-of-8 divisor of m that is <= min(target, m // 2), so
    the grid has >= 2 tiles (keeps both v7x TensorCores busy); falls back to m
    itself (full-dim block is always legal)."""
    if m % 8 != 0:
        return m
    cap = (min(target, m // 2) // 8) * 8
    t = cap
    while t >= 8:
        if m % t == 0:
            return t
        t -= 8
    return m


# ----------------------------- Pallas kernels -------------------------------

def _conv_stats_kernel(x_ref, w_ref, y_ref, stats_ref, *, kh, kw, stride, ho, wo):
    """Direct conv (reduction over kh*kw shifted slabs) + fused BN statistics.

    x_ref:     (1, s*s, Hs, Ws, Cin) bf16  phase-decomposed padded input image
    w_ref:     (kh*kw, Cin, Cout)    bf16  VMEM-resident weights
    y_ref:     (1, ho*wo, Cout)      bf16  conv output for this image
    stats_ref: (1, 2, Cout)          f32   row 0: column sums, row 1: centered SS
    """
    s = stride
    cin = x_ref.shape[-1]
    acc = None
    for ki in range(kh):
        for kj in range(kw):
            phase = (ki % s) * s + (kj % s)
            a = x_ref[0, phase, pl.ds(ki // s, ho), pl.ds(kj // s, wo), :]
            a = a.reshape(ho * wo, cin)
            contrib = jnp.dot(a, w_ref[ki * kw + kj],
                              preferred_element_type=jnp.float32)
            acc = contrib if acc is None else acc + contrib
    y_ref[0] = acc.astype(y_ref.dtype)
    # BN statistics from the f32 accumulator (centered SS avoids cancellation).
    col_sum = jnp.sum(acc, axis=0)                    # (Cout,)
    mu = col_sum * (1.0 / (ho * wo))
    css = jnp.sum((acc - mu) ** 2, axis=0)            # (Cout,)
    stats_ref[0, 0, :] = col_sum
    stats_ref[0, 1, :] = css


def _bn_act_kernel(y_ref, scale_ref, shift_ref, o_ref, *, relu):
    out = y_ref[...].astype(jnp.float32) * scale_ref[...] + shift_ref[...]
    if relu:
        out = jnp.maximum(out, 0.0)
    o_ref[...] = out.astype(o_ref.dtype)


def _bn_add_relu_kernel(y_ref, r_ref, scale_ref, shift_ref,
                        rscale_ref, rshift_ref, o_ref):
    out = y_ref[...].astype(jnp.float32) * scale_ref[...] + shift_ref[...]
    out = out + r_ref[...].astype(jnp.float32) * rscale_ref[...] + rshift_ref[...]
    o_ref[...] = jnp.maximum(out, 0.0).astype(o_ref.dtype)


# --------------------------- pallas_call wrappers ---------------------------

def _conv2d_bn_stats(x_nhwc, w_oihw, stride, padding):
    """3x3 / 1x1 conv (bf16 MXU, f32 accum) fused with per-image BN stats.

    Returns y (N, Ho*Wo, Cout) bf16, stats (N, 2, Cout) f32, Ho, Wo.
    No im2col matrix is materialised in HBM.
    """
    n, h, w, cin = x_nhwc.shape
    cout, cin2, kh, kw = w_oihw.shape
    assert cin == cin2
    s = stride
    ho = (h + 2 * padding - kh) // s + 1
    wo = (w + 2 * padding - kw) // s + 1
    hp = _round_up(h + 2 * padding, s)
    wp = _round_up(w + 2 * padding, s)
    xp = jnp.pad(x_nhwc.astype(jnp.bfloat16),
                 ((0, 0), (padding, hp - h - padding),
                  (padding, wp - w - padding), (0, 0)))
    hs, ws = hp // s, wp // s
    # phases[n, a*s+b, i, j, :] == xp[n, i*s+a, j*s+b, :]  (free when s == 1).
    phases = xp.reshape(n, hs, s, ws, s, cin).transpose(0, 2, 4, 1, 3, 5)
    phases = phases.reshape(n, s * s, hs, ws, cin)
    wk = jnp.transpose(w_oihw.astype(jnp.bfloat16),
                       (2, 3, 1, 0)).reshape(kh * kw, cin, cout)

    kernel = functools.partial(_conv_stats_kernel,
                               kh=kh, kw=kw, stride=s, ho=ho, wo=wo)
    cost = pl.CostEstimate(
        flops=2 * n * ho * wo * kh * kw * cin * cout,
        transcendentals=0,
        bytes_accessed=(phases.size + wk.size + n * ho * wo * cout) * 2
        + n * 2 * cout * 4)

    y, stats = pl.pallas_call(
        kernel,
        out_shape=(jax.ShapeDtypeStruct((n, ho * wo, cout), jnp.bfloat16),
                   jax.ShapeDtypeStruct((n, 2, cout), jnp.float32)),
        grid_spec=pltpu.PrefetchScalarGridSpec(
            num_scalar_prefetch=0,
            grid=(n,),
            in_specs=[
                pl.BlockSpec((1, s * s, hs, ws, cin),
                             lambda i: (i, 0, 0, 0, 0)),
                # Constant index_map -> weights DMA'd once and kept in VMEM.
                pl.BlockSpec((kh * kw, cin, cout), lambda i: (0, 0, 0)),
            ],
            out_specs=[
                pl.BlockSpec((1, ho * wo, cout), lambda i: (i, 0, 0)),
                pl.BlockSpec((1, 2, cout), lambda i: (i, 0, 0)),
            ]),
        compiler_params=pltpu.CompilerParams(
            dimension_semantics=("parallel",),
            vmem_limit_bytes=_VMEM_LIMIT),
        cost_estimate=cost,
    )(phases, wk)
    return y, stats, ho, wo


def _bn_apply(y, scale, shift, *, relu, out_dtype):
    m, c = y.shape
    tm = _pick_rows(m)
    row_spec = pl.BlockSpec((tm, c), lambda i: (i, 0))
    vec_spec = pl.BlockSpec((1, c), lambda i: (0, 0))
    return pl.pallas_call(
        functools.partial(_bn_act_kernel, relu=relu),
        out_shape=jax.ShapeDtypeStruct((m, c), out_dtype),
        grid_spec=pltpu.PrefetchScalarGridSpec(
            num_scalar_prefetch=0,
            grid=(m // tm,),
            in_specs=[row_spec, vec_spec, vec_spec],
            out_specs=row_spec),
        compiler_params=pltpu.CompilerParams(
            dimension_semantics=("parallel",),
            vmem_limit_bytes=_VMEM_LIMIT),
    )(y, scale, shift)


def _bn_add_relu(y, r, scale, shift, rscale, rshift, *, out_dtype):
    m, c = y.shape
    tm = _pick_rows(m)
    row_spec = pl.BlockSpec((tm, c), lambda i: (i, 0))
    vec_spec = pl.BlockSpec((1, c), lambda i: (0, 0))
    return pl.pallas_call(
        _bn_add_relu_kernel,
        out_shape=jax.ShapeDtypeStruct((m, c), out_dtype),
        grid_spec=pltpu.PrefetchScalarGridSpec(
            num_scalar_prefetch=0,
            grid=(m // tm,),
            in_specs=[row_spec, row_spec, vec_spec, vec_spec, vec_spec, vec_spec],
            out_specs=row_spec),
        compiler_params=pltpu.CompilerParams(
            dimension_semantics=("parallel",),
            vmem_limit_bytes=_VMEM_LIMIT),
    )(y, r, scale, shift, rscale, rshift)


# ------------------------------ JAX glue ------------------------------------

def _combine_stats(stats, rows_per_tile, total_rows):
    """Per-image (sum, centered-SS) -> global mean and biased variance.

    Every tile has exactly `rows_per_tile` rows (one image per grid step), so
    the parallel-variance combination below is exact."""
    sums = stats[:, 0, :]
    css = stats[:, 1, :]
    tile_mean = sums / rows_per_tile
    mean = jnp.sum(sums, axis=0) / total_rows
    m2 = jnp.sum(css, axis=0) + rows_per_tile * jnp.sum(
        (tile_mean - mean[None, :]) ** 2, axis=0)
    var = m2 / total_rows
    return mean, var


def _affine(gamma, beta, mean, var):
    scale = gamma.reshape(-1).astype(jnp.float32) * jax.lax.rsqrt(var + EPS)
    shift = beta.reshape(-1).astype(jnp.float32) - mean * scale
    return scale.reshape(1, -1), shift.reshape(1, -1)


def basic_block_forward(x_nchw, params, stride):
    """Forward of the PyTorch BasicBlock (training-mode BN). NCHW in / NCHW out."""
    x = jnp.transpose(x_nchw, (0, 2, 3, 1)).astype(jnp.float32)     # NHWC
    n, h, w, cin = x.shape
    planes = params["w1"].shape[0]

    # out = relu(bn1(conv1(x)))
    y1, st1, ho, wo = _conv2d_bn_stats(x, params["w1"], stride, 1)
    rows = ho * wo
    total = n * rows
    mu1, var1 = _combine_stats(st1, rows, total)
    sc1, sh1 = _affine(params["g1"], params["b1"], mu1, var1)
    out1 = _bn_apply(y1.reshape(total, planes), sc1, sh1,
                     relu=True, out_dtype=jnp.bfloat16)

    # bn2(conv2(out))
    y2, st2, _, _ = _conv2d_bn_stats(out1.reshape(n, ho, wo, planes),
                                     params["w2"], 1, 1)
    mu2, var2 = _combine_stats(st2, rows, total)
    sc2, sh2 = _affine(params["g2"], params["b2"], mu2, var2)

    # shortcut(x): 1x1 conv + BN, or identity (original f32 activation, no copy)
    if params.get("w_sc") is not None:
        ysc, stsc, _, _ = _conv2d_bn_stats(x, params["w_sc"], stride, 0)
        musc, varsc = _combine_stats(stsc, rows, total)
        rsc, rsh = _affine(params["g_sc"], params["b_sc"], musc, varsc)
        res = ysc.reshape(total, planes)
    else:
        assert stride == 1 and cin == planes, \
            "identity shortcut requires stride==1 and in_planes==planes"
        res = x.reshape(total, planes)             # zero-copy reshape, stays f32
        rsc = jnp.ones((1, planes), jnp.float32)
        rsh = jnp.zeros((1, planes), jnp.float32)

    # relu(bn2(conv2(out)) + shortcut(x)) — one fused elementwise pass
    out = _bn_add_relu(y2.reshape(total, planes), res, sc2, sh2, rsc, rsh,
                       out_dtype=jnp.float32)
    out = out.reshape(n, ho, wo, planes)
    return jnp.transpose(out, (0, 3, 1, 2))                         # NCHW


# --------------------------- pure-JAX reference -----------------------------

def ref_forward(x_nchw, params, stride):
    """Mirrors the kernel's precision policy: bf16 conv inputs/weights with f32
    accumulation, bf16-stored conv outputs, BN statistics from the f32
    accumulator (training-mode, biased variance)."""
    def conv(x, w, s, p):
        return jax.lax.conv_general_dilated(
            x.astype(jnp.bfloat16), w.astype(jnp.bfloat16), (s, s),
            ((p, p), (p, p)), dimension_numbers=("NCHW", "OIHW", "NCHW"),
            preferred_element_type=jnp.float32)

    def bn(y, g, b):
        mean = jnp.mean(y, axis=(0, 2, 3), keepdims=True)
        var = jnp.mean((y - mean) ** 2, axis=(0, 2, 3), keepdims=True)
        yq = y.astype(jnp.bfloat16).astype(jnp.float32)   # kernel stores y as bf16
        return ((yq - mean) * jax.lax.rsqrt(var + EPS)
                * g.reshape(1, -1, 1, 1) + b.reshape(1, -1, 1, 1))

    out = jax.nn.relu(bn(conv(x_nchw, params["w1"], stride, 1),
                         params["g1"], params["b1"]))
    out = bn(conv(out, params["w2"], 1, 1), params["g2"], params["b2"])
    if params.get("w_sc") is not None:
        sc = bn(conv(x_nchw, params["w_sc"], stride, 0),
                params["g_sc"], params["b_sc"])
    else:
        sc = x_nchw
    return jax.nn.relu(out + sc)


# --------------------------------- main --------------------------------------

def _make_params(key, in_planes, planes, with_shortcut):
    k1, k2, k3 = jax.random.split(key, 3)
    params = {
        "w1": 0.1 * jax.random.normal(k1, (planes, in_planes, 3, 3), jnp.float32),
        "g1": jnp.ones((planes,), jnp.float32),
        "b1": jnp.zeros((planes,), jnp.float32),
        "w2": 0.1 * jax.random.normal(k2, (planes, planes, 3, 3), jnp.float32),
        "g2": jnp.ones((planes,), jnp.float32),
        "b2": jnp.zeros((planes,), jnp.float32),
        "w_sc": None, "g_sc": None, "b_sc": None,
    }
    if with_shortcut:
        params["w_sc"] = 0.1 * jax.random.normal(
            k3, (planes, in_planes, 1, 1), jnp.float32)
        params["g_sc"] = jnp.ones((planes,), jnp.float32)
        params["b_sc"] = jnp.zeros((planes,), jnp.float32)
    return params


if __name__ == "__main__":
    key = jax.random.PRNGKey(0)
    k_x1, k_p1, k_x2, k_p2 = jax.random.split(key, 4)

    # Case 1: downsampling block (stride=2, in_planes != planes -> 1x1 conv shortcut).
    N, in_planes, planes, H, W, stride = 2, 4, 8, 16, 16, 2
    x1 = jax.random.normal(k_x1, (N, in_planes, H, W), jnp.float32)
    p1 = _make_params(k_p1, in_planes, planes, with_shortcut=True)
    out1 = jax.block_until_ready(basic_block_forward(x1, p1, stride))
    ref1 = jax.block_until_ready(ref_forward(x1, p1, stride))
    assert out1.shape == (N, planes, H // stride, W // stride), out1.shape
    err1 = float(jnp.max(jnp.abs(out1 - ref1)))
    assert jnp.allclose(out1, ref1, atol=1e-2, rtol=1e-2), err1

    # Case 2: identity-shortcut block (stride=1, in_planes == planes).
    x2 = jax.random.normal(k_x2, (N, planes, H, W), jnp.float32)
    p2 = _make_params(k_p2, planes, planes, with_shortcut=False)
    out2 = jax.block_until_ready(basic_block_forward(x2, p2, 1))
    ref2 = jax.block_until_ready(ref_forward(x2, p2, 1))
    assert out2.shape == (N, planes, H, W), out2.shape
    err2 = float(jnp.max(jnp.abs(out2 - ref2)))
    assert jnp.allclose(out2, ref2, atol=1e-2, rtol=1e-2), err2

    print("KERNEL_OK")
</pallas_src>

<mosaic_0001>
module attributes {stable_mosaic.version = 11 : i64} {
  func.func @_conv_stats_kernel(%arg0: i32, %arg1: memref<1x4x9x9x4xbf16, #tpu.memory_space<vmem>>, %arg2: memref<9x4x8xbf16, #tpu.memory_space<vmem>>, %arg3: memref<1x64x8xbf16, #tpu.memory_space<vmem>>, %arg4: memref<1x2x8xf32, #tpu.memory_space<vmem>>) attributes {dimension_semantics = [#tpu.dimension_semantics<parallel>], iteration_bounds = array<i64: 2>, scalar_prefetch = 0 : i64, scratch_operands = 0 : i64, tpu.core_type = #tpu.core_type<tc>, window_params = [{transform_indices = @transform_0, window_bounds = array<i64: 1, 4, 9, 9, 4>}, {pipeline_mode = #tpu.pipeline_mode<synchronous>, transform_indices = @transform_1, window_bounds = array<i64: 9, 4, 8>}, {transform_indices = @transform_2, window_bounds = array<i64: 1, 64, 8>}, {transform_indices = @transform_3, window_bounds = array<i64: 1, 2, 8>}]} {
    %c0 = arith.constant 0 : index
    %c0_0 = arith.constant 0 : index
    %c0_1 = arith.constant 0 : index
    %c0_2 = arith.constant 0 : index
    %c0_3 = arith.constant 0 : index
    %0 = vector.load %arg1[%c0, %c0_0, %c0_1, %c0_2, %c0_3] : memref<1x4x9x9x4xbf16, #tpu.memory_space<vmem>>, vector<1x1x8x8x4xbf16>
    %1 = vector.shape_cast %0 : vector<1x1x8x8x4xbf16> to vector<8x8x4xbf16>
    %2 = vector.shape_cast %1 : vector<8x8x4xbf16> to vector<64x4xbf16>
    %c0_4 = arith.constant 0 : index
    %c0_5 = arith.constant 0 : index
    %c0_6 = arith.constant 0 : index
    %3 = vector.load %arg2[%c0_4, %c0_5, %c0_6] : memref<9x4x8xbf16, #tpu.memory_space<vmem>>, vector<1x4x8xbf16>
    %4 = vector.shape_cast %3 : vector<1x4x8xbf16> to vector<4x8xbf16>
    %cst = arith.constant dense<0.000000e+00> : vector<64x8xf32>
    %5 = tpu.matmul %2, %4, %cst {dimension_numbers = #tpu.dot_dimension_numbers<[1], [0], [0], [1], [0, 0, 1, 1], [], []>} : vector<64x4xbf16>, vector<4x8xbf16>, vector<64x8xf32> -> vector<64x8xf32>
    %c0_7 = arith.constant 0 : index
    %c1 = arith.constant 1 : index
    %c0_8 = arith.constant 0 : index
    %c0_9 = arith.constant 0 : index
    %c0_10 = arith.constant 0 : index
    %6 = vector.load %arg1[%c0_7, %c1, %c0_8, %c0_9, %c0_10] : memref<1x4x9x9x4xbf16, #tpu.memory_space<vmem>>, vector<1x1x8x8x4xbf16>
    %7 = vector.shape_cast %6 : vector<1x1x8x8x4xbf16> to vector<8x8x4xbf16>
    %8 = vector.shape_cast %7 : vector<8x8x4xbf16> to vector<64x4xbf16>
    %c1_11 = arith.constant 1 : index
    %c0_12 = arith.constant 0 : index
    %c0_13 = arith.constant 0 : index
    %9 = vector.load %arg2[%c1_11, %c0_12, %c0_13] : memref<9x4x8xbf16, #tpu.memory_space<vmem>>, vector<1x4x8xbf16>
    %10 = vector.shape_cast %9 : vector<1x4x8xbf16> to vector<4x8xbf16>
    %cst_14 = arith.constant dense<0.000000e+00> : vector<64x8xf32>
    %11 = tpu.matmul %8, %10, %cst_14 {dimension_numbers = #tpu.dot_dimension_numbers<[1], [0], [0], [1], [0, 0, 1, 1], [], []>} : vector<64x4xbf16>, vector<4x8xbf16>, vector<64x8xf32> -> vector<64x8xf32>
    %12 = arith.addf %5, %11 : vector<64x8xf32>
    %c0_15 = arith.constant 0 : index
    %c0_16 = arith.constant 0 : index
    %c0_17 = arith.constant 0 : index
    %c1_18 = arith.constant 1 : index
    %c0_19 = arith.constant 0 : index
    %13 = vector.load %arg1[%c0_15, %c0_16, %c0_17, %c1_18, %c0_19] : memref<1x4x9x9x4xbf16, #tpu.memory_space<vmem>>, vector<1x1x8x8x4xbf16>
    %14 = vector.shape_cast %13 : vector<1x1x8x8x4xbf16> to vector<8x8x4xbf16>
    %15 = vector.shape_cast %14 : vector<8x8x4xbf16> to vector<64x4xbf16>
    %c2 = arith.constant 2 : index
    %c0_20 = arith.constant 0 : index
    %c0_21 = arith.constant 0 : index
    %16 = vector.load %arg2[%c2, %c0_20, %c0_21] : memref<9x4x8xbf16, #tpu.memory_space<vmem>>, vector<1x4x8xbf16>
    %17 = vector.shape_cast %16 : vector<1x4x8xbf16> to vector<4x8xbf16>
    %cst_22 = arith.constant dense<0.000000e+00> : vector<64x8xf32>
    %18 = tpu.matmul %15, %17, %cst_22 {dimension_numbers = #tpu.dot_dimension_numbers<[1], [0], [0], [1], [0, 0, 1, 1], [], []>} : vector<64x4xbf16>, vector<4x8xbf16>, vector<64x8xf32> -> vector<64x8xf32>
    %19 = arith.addf %12, %18 : vector<64x8xf32>
    %c0_23 = arith.constant 0 : index
    %c2_24 = arith.constant 2 : index
    %c0_25 = arith.constant 0 : index
    %c0_26 = arith.constant 0 : index
    %c0_27 = arith.constant 0 : index
    %20 = vector.load %arg1[%c0_23, %c2_24, %c0_25, %c0_26, %c0_27] : memref<1x4x9x9x4xbf16, #tpu.memory_space<vmem>>, vector<1x1x8x8x4xbf16>
    %21 = vector.shape_cast %20 : vector<1x1x8x8x4xbf16> to vector<8x8x4xbf16>
    %22 = vector.shape_cast %21 : vector<8x8x4xbf16> to vector<64x4xbf16>
    %c3 = arith.constant 3 : index
    %c0_28 = arith.constant 0 : index
    %c0_29 = arith.constant 0 : index
    %23 = vector.load %arg2[%c3, %c0_28, %c0_29] : memref<9x4x8xbf16, #tpu.memory_space<vmem>>, vector<1x4x8xbf16>
    %24 = vector.shape_cast %23 : vector<1x4x8xbf16> to vector<4x8xbf16>
    %cst_30 = arith.constant dense<0.000000e+00> : vector<64x8xf32>
    %25 = tpu.matmul %22, %24, %cst_30 {dimension_numbers = #tpu.dot_dimension_numbers<[1], [0], [0], [1], [0, 0, 1, 1], [], []>} : vector<64x4xbf16>, vector<4x8xbf16>, vector<64x8xf32> -> vector<64x8xf32>
    %26 = arith.addf %19, %25 : vector<64x8xf32>
    %c0_31 = arith.constant 0 : index
    %c3_32 = arith.constant 3 : index
    %c0_33 = arith.constant 0 : index
    %c0_34 = arith.constant 0 : index
    %c0_35 = arith.constant 0 : index
    %27 = vector.load %arg1[%c0_31, %c3_32, %c0_33, %c0_34, %c0_35] : memref<1x4x9x9x4xbf16, #tpu.memory_space<vmem>>, vector<1x1x8x8x4xbf16>
    %28 = vector.shape_cast %27 : vector<1x1x8x8x4xbf16> to vector<8x8x4xbf16>
    %29 = vector.shape_cast %28 : vector<8x8x4xbf16> to vector<64x4xbf16>
    %c4 = arith.constant 4 : index
    %c0_36 = arith.constant 0 : index
    %c0_37 = arith.constant 0 : index
    %30 = vector.load %arg2[%c4, %c0_36, %c0_37] : memref<9x4x8xbf16, #tpu.memory_space<vmem>>, vector<1x4x8xbf16>
    %31 = vector.shape_cast %30 : vector<1x4x8xbf16> to vector<4x8xbf16>
    %cst_38 = arith.constant dense<0.000000e+00> : vector<64x8xf32>
    %32 = tpu.matmul %29, %31, %cst_38 {dimension_numbers = #tpu.dot_dimension_numbers<[1], [0], [0], [1], [0, 0, 1, 1], [], []>} : vector<64x4xbf16>, vector<4x8xbf16>, vector<64x8xf32> -> vector<64x8xf32>
    %33 = arith.addf %26, %32 : vector<64x8xf32>
    %c0_39 = arith.constant 0 : index
    %c2_40 = arith.constant 2 : index
    %c0_41 = arith.constant 0 : index
    %c1_42 = arith.constant 1 : index
    %c0_43 = arith.constant 0 : index
    %34 = vector.load %arg1[%c0_39, %c2_40, %c0_41, %c1_42, %c0_43] : memref<1x4x9x9x4xbf16, #tpu.memory_space<vmem>>, vector<1x1x8x8x4xbf16>
    %35 = vector.shape_cast %34 : vector<1x1x8x8x4xbf16> to vector<8x8x4xbf16>
    %36 = vector.shape_cast %35 : vector<8x8x4xbf16> to vector<64x4xbf16>
    %c5 = arith.constant 5 : index
    %c0_44 = arith.constant 0 : index
    %c0_45 = arith.constant 0 : index
    %37 = vector.load %arg2[%c5, %c0_44, %c0_45] : memref<9x4x8xbf16, #tpu.memory_space<vmem>>, vector<1x4x8xbf16>
    %38 = vector.shape_cast %37 : vector<1x4x8xbf16> to vector<4x8xbf16>
    %cst_46 = arith.constant dense<0.000000e+00> : vector<64x8xf32>
    %39 = tpu.matmul %36, %38, %cst_46 {dimension_numbers = #tpu.dot_dimension_numbers<[1], [0], [0], [1], [0, 0, 1, 1], [], []>} : vector<64x4xbf16>, vector<4x8xbf16>, vector<64x8xf32> -> vector<64x8xf32>
    %40 = arith.addf %33, %39 : vector<64x8xf32>
    %c0_47 = arith.constant 0 : index
    %c0_48 = arith.constant 0 : index
    %c1_49 = arith.constant 1 : index
    %c0_50 = arith.constant 0 : index
    %c0_51 = arith.constant 0 : index
    %41 = vector.load %arg1[%c0_47, %c0_48, %c1_49, %c0_50, %c0_51] : memref<1x4x9x9x4xbf16, #tpu.memory_space<vmem>>, vector<1x1x8x8x4xbf16>
    %42 = vector.shape_cast %41 : vector<1x1x8x8x4xbf16> to vector<8x8x4xbf16>
    %43 = vector.shape_cast %42 : vector<8x8x4xbf16> to vector<64x4xbf16>
    %c6 = arith.constant 6 : index
    %c0_52 = arith.constant 0 : index
    %c0_53 = arith.constant 0 : index
    %44 = vector.load %arg2[%c6, %c0_52, %c0_53] : memref<9x4x8xbf16, #tpu.memory_space<vmem>>, vector<1x4x8xbf16>
    %45 = vector.shape_cast %44 : vector<1x4x8xbf16> to vector<4x8xbf16>
    %cst_54 = arith.constant dense<0.000000e+00> : vector<64x8xf32>
    %46 = tpu.matmul %43, %45, %cst_54 {dimension_numbers = #tpu.dot_dimension_numbers<[1], [0], [0], [1], [0, 0, 1, 1], [], []>} : vector<64x4xbf16>, vector<4x8xbf16>, vector<64x8xf32> -> vector<64x8xf32>
    %47 = arith.addf %40, %46 : vector<64x8xf32>
    %c0_55 = arith.constant 0 : index
    %c1_56 = arith.constant 1 : index
    %c1_57 = arith.constant 1 : index
    %c0_58 = arith.constant 0 : index
    %c0_59 = arith.constant 0 : index
    %48 = vector.load %arg1[%c0_55, %c1_56, %c1_57, %c0_58, %c0_59] : memref<1x4x9x9x4xbf16, #tpu.memory_space<vmem>>, vector<1x1x8x8x4xbf16>
    %49 = vector.shape_cast %48 : vector<1x1x8x8x4xbf16> to vector<8x8x4xbf16>
    %50 = vector.shape_cast %49 : vector<8x8x4xbf16> to vector<64x4xbf16>
    %c7 = arith.constant 7 : index
    %c0_60 = arith.constant 0 : index
    %c0_61 = arith.constant 0 : index
    %51 = vector.load %arg2[%c7, %c0_60, %c0_61] : memref<9x4x8xbf16, #tpu.memory_space<vmem>>, vector<1x4x8xbf16>
    %52 = vector.shape_cast %51 : vector<1x4x8xbf16> to vector<4x8xbf16>
    %cst_62 = arith.constant dense<0.000000e+00> : vector<64x8xf32>
    %53 = tpu.matmul %50, %52, %cst_62 {dimension_numbers = #tpu.dot_dimension_numbers<[1], [0], [0], [1], [0, 0, 1, 1], [], []>} : vector<64x4xbf16>, vector<4x8xbf16>, vector<64x8xf32> -> vector<64x8xf32>
    %54 = arith.addf %47, %53 : vector<64x8xf32>
    %c0_63 = arith.constant 0 : index
    %c0_64 = arith.constant 0 : index
    %c1_65 = arith.constant 1 : index
    %c1_66 = arith.constant 1 : index
    %c0_67 = arith.constant 0 : index
    %55 = vector.load %arg1[%c0_63, %c0_64, %c1_65, %c1_66, %c0_67] : memref<1x4x9x9x4xbf16, #tpu.memory_space<vmem>>, vector<1x1x8x8x4xbf16>
    %56 = vector.shape_cast %55 : vector<1x1x8x8x4xbf16> to vector<8x8x4xbf16>
    %57 = vector.shape_cast %56 : vector<8x8x4xbf16> to vector<64x4xbf16>
    %c8 = arith.constant 8 : index
    %c0_68 = arith.constant 0 : index
    %c0_69 = arith.constant 0 : index
    %58 = vector.load %arg2[%c8, %c0_68, %c0_69] : memref<9x4x8xbf16, #tpu.memory_space<vmem>>, vector<1x4x8xbf16>
    %59 = vector.shape_cast %58 : vector<1x4x8xbf16> to vector<4x8xbf16>
    %cst_70 = arith.constant dense<0.000000e+00> : vector<64x8xf32>
    %60 = tpu.matmul %57, %59, %cst_70 {dimension_numbers = #tpu.dot_dimension_numbers<[1], [0], [0], [1], [0, 0, 1, 1], [], []>} : vector<64x4xbf16>, vector<4x8xbf16>, vector<64x8xf32> -> vector<64x8xf32>
    %61 = arith.addf %54, %60 : vector<64x8xf32>
    %62 = arith.truncf %61 : vector<64x8xf32> to vector<64x8xbf16>
    %c0_71 = arith.constant 0 : index
    %c0_72 = arith.constant 0 : index
    %c0_73 = arith.constant 0 : index
    %63 = vector.load %arg3[%c0_71, %c0_72, %c0_73] : memref<1x64x8xbf16, #tpu.memory_space<vmem>>, vector<1x64x8xbf16>
    %64 = vector.shape_cast %63 : vector<1x64x8xbf16> to vector<64x8xbf16>
    %65 = vector.shape_cast %62 : vector<64x8xbf16> to vector<1x64x8xbf16>
    tpu.vector_store %arg3[%c0_71, %c0_72, %c0_73], %65 {strides = array<i32>} : memref<1x64x8xbf16, #tpu.memory_space<vmem>>, vector<1x64x8xbf16>,
    %cst_74 = arith.constant dense<0.000000e+00> : vector<8xf32>
    %66 = vector.multi_reduction <add>, %61, %cst_74 [0] : vector<64x8xf32> to vector<8xf32>
    %cst_75 = arith.constant 1.562500e-02 : f32
    %67 = vector.broadcast %cst_75 : f32 to vector<8xf32>
    %68 = arith.mulf %66, %67 : vector<8xf32>
    %69 = vector.shape_cast %68 : vector<8xf32> to vector<1x8xf32>
    %70 = vector.broadcast %69 : vector<1x8xf32> to vector<64x8xf32>
    %71 = arith.subf %61, %70 : vector<64x8xf32>
    %72 = arith.mulf %71, %71 : vector<64x8xf32>
    %cst_76 = arith.constant dense<0.000000e+00> : vector<8xf32>
    %73 = vector.multi_reduction <add>, %72, %cst_76 [0] : vector<64x8xf32> to vector<8xf32>
    %c0_77 = arith.constant 0 : index
    %c0_78 = arith.constant 0 : index
    %c0_79 = arith.constant 0 : index
    %74 = vector.load %arg4[%c0_77, %c0_78, %c0_79] : memref<1x2x8xf32, #tpu.memory_space<vmem>>, vector<1x1x8xf32>
    %75 = vector.shape_cast %74 : vector<1x1x8xf32> to vector<8xf32>
    %76 = vector.shape_cast %66 : vector<8xf32> to vector<1x1x8xf32>
    tpu.vector_store %arg4[%c0_77, %c0_78, %c0_79], %76 {strides = array<i32>} : memref<1x2x8xf32, #tpu.memory_space<vmem>>, vector<1x1x8xf32>,
    %c0_80 = arith.constant 0 : index
    %c1_81 = arith.constant 1 : index
    %c0_82 = arith.constant 0 : index
    %77 = vector.load %arg4[%c0_80, %c1_81, %c0_82] : memref<1x2x8xf32, #tpu.memory_space<vmem>>, vector<1x1x8xf32>
    %78 = vector.shape_cast %77 : vector<1x1x8xf32> to vector<8xf32>
    %79 = vector.shape_cast %73 : vector<8xf32> to vector<1x1x8xf32>
    tpu.vector_store %arg4[%c0_80, %c1_81, %c0_82], %79 {strides = array<i32>} : memref<1x2x8xf32, #tpu.memory_space<vmem>>, vector<1x1x8xf32>,
    return
  }
  func.func @transform_0(%arg0: i32) -> (i32, i32, i32, i32, i32) {
    %c0_i32 = arith.constant 0 : i32
    %c0_i32_0 = arith.constant 0 : i32
    %c0_i32_1 = arith.constant 0 : i32
    %c0_i32_2 = arith.constant 0 : i32
    %c0_i32_3 = arith.constant 0 : i32
    return %arg0, %c0_i32, %c0_i32_0, %c0_i32_1, %c0_i32_2 : i32, i32, i32, i32, i32
  }
  func.func @transform_1(%arg0: i32) -> (i32, i32, i32) {
    %c0_i32 = arith.constant 0 : i32
    %c0_i32_0 = arith.constant 0 : i32
    %c0_i32_1 = arith.constant 0 : i32
    %c0_i32_2 = arith.constant 0 : i32
    return %c0_i32, %c0_i32_0, %c0_i32_1 : i32, i32, i32
  }
  func.func @transform_2(%arg0: i32) -> (i32, i32, i32) {
    %c0_i32 = arith.constant 0 : i32
    %c0_i32_0 = arith.constant 0 : i32
    %c0_i32_1 = arith.constant 0 : i32
    return %arg0, %c0_i32, %c0_i32_0 : i32, i32, i32
  }
  func.func @transform_3(%arg0: i32) -> (i32, i32, i32) {
    %c0_i32 = arith.constant 0 : i32
    %c0_i32_0 = arith.constant 0 : i32
    %c0_i32_1 = arith.constant 0 : i32
    return %arg0, %c0_i32, %c0_i32_0 : i32, i32, i32
  }
}

</mosaic_0001>

<bundles_post_ra>
// kernel: tpu_custom_call.1
= control target key start
LH: loop header
LB: loop body
LE: loop exit
PB: predicated region body
PF: predicated region fallthrough
CT: control target
= control target key end

     0   :  { %9 = vsyncpa [#allocation3], 0  ;;  %s2263_s0 = inlined_call_operand.vmem [shape: bf16[2,4,9,9,4], index: 0, kind: input, shape index: {}]   ;;  %s2264_s1 = inlined_call_operand.vmem [shape: bf16[9,4,8], index: 1, kind: input, shape index: {}]   ;;  %s2265_s2 = inlined_call_operand.vmem [shape: bf16[2,64,8], index: 2, kind: output, shape index: {0}]   ;;  %s2266_s3 = inlined_call_operand.hbm [shape: f32[2,2,8], index: 3, kind: output, shape index: {1}]  }
   0x1   :  { %11 = vsyncpa [#allocation3 + $0x1], 0  ;;  %s1814_s12 = smov 0   ;;  %s1816_s13 = smov 0  }
   0x2   :  { %s1818_s14 = smov 0   ;;  %s1820_s15 = smov 0  }
   0x3 LB: > { %s1835_s16 = sadd.s32 4294967295, %s1792_s15   ;;  %s1438_s17 = sadd.s32 4294967294, %s1792_s15   ;;  %s1792_s15 = sphi %s1820_s15, %s2274_s15   ;;  %s1788_s14 = sphi %s1818_s14, %s2273_s14   ;;  %s1784_s13 = sphi %s1816_s13, %s2272_s13   ;;  %s1780_s12 = sphi %s1814_s12, %s2271_s12  }
   0x4   : > { %s1839_s18 = sadd.s32 1, %s1792_s15   ;;  %s97_s19 = sadd.s32 1, %s1788_s14 }
   0x5   : > { %s94_s20 = ssub.s32 %s1792_s15, %s1839_s18  ;;  %p107_p0 = scmp.ne.s32.totalorder %s1788_s14, %s1784_s13 }
   0x6   : > { %p95_p1 = scmp.eq.s32.totalorder %s94_s20, 0  ;;  %p108_p2 = scmp.eq.s32.totalorder %s1835_s16, 1 }
   0x7   : > { %p113_p3 = scmp.ne.s32.totalorder %s1784_s13, %s1780_s12  ;;  %p114_p4 = scmp.eq.s32.totalorder %s1438_s17, 1 }
   0x8   : > { %s1850_s21 = scalar_select %p95_p1, %s1788_s14, %s97_s19  }
   0x9   : > { %p1852_p5 = por %p108_p2, %p107_p0  ;;  %p1856_p6 = por %p114_p4, %p113_p3 }
   0xa   : > { %p1441_p7 = scmp.ge.s32.totalorder %s1792_s15, 1  ;;  %p143_p8 = scmp.lt.s32.totalorder %s1792_s15, 3 }
   0xc   : > { %p144_p9 = pnand %p1441_p7, %p143_p8 }
   0xd   : > { %p172_p10 = scmp.lt.s32.totalorder (!%p144_p9), %s1835_s16, 1  ;;  %s1659_s9 = sshll.u32 (!%p144_p9), %s1835_s16, 1 }
   0xe   : > { %147 = sbr.rel (%p144_p9) target bundleno = 353 (0x161), region = 28  ;;  %s1349_s17 = scalar_lea.hbm (!%p144_p9), %s2266_s3, %s1659_s9 }
   0xf   : > { %s1353_s20 = sshll.u32 (!%p144_p9), %s1349_s17, 4  ;;  %s1750_s28 = scalar_lea.hbm (!%p144_p9), %s2266_s3, 4  ;;  %s1354_s20 = int_to_ptr.hbm [resolvable:$true] %s1353_s20 }
  0x10   : > { %s1744_s25 = sshra.s32 (!%p144_p9), %s1354_s20, 4  ;;  %s1745_s25 = int_to_ptr.hbm [resolvable:$true] %s1744_s25 }
  0x11   : > { %p1751_p0 = scmp.lt.s32.totalorder (!%p144_p9), %s1745_s25, %s2266_s3 }
  0x13   : > { %v1454_v0 = vld [vmem:[%s2264_s1 + $0x2] sm:$0x3]  ;;  %vm236_vm0 = vcmask 1041408   ;;  %v1495_v2 = vld [vmem:[%s2264_s1 + $0x4] sm:$0x3]  ;;  %s1874_s30 = scalar_select %p172_p10, %s1835_s16, 1 }
  0x14   : > { %v238_v1 = vsel %vm236_vm0, %v1454_v0, 0  ;;  %v1508_v3 = vld [vmem:[%s2264_s1 + $0x6] sm:$0x3]  ;;  %v491_v4 = vsel %vm236_vm0, %v1495_v2, 0  ;;  %v191_v6 = vld [vmem:[%s2264_s1] sm:$0x3] }
  0x15   : > { %1687 = vmatpush.bf16.msra.mxu1 %v238_v1  ;;  %1688 = vmatpush.bf16.msra.mxu2 %v238_v1  ;;  %v574_v5 = vsel %vm236_vm0, %v1508_v3, 0  ;;  %v302_v7 = vsel %vm236_vm0, %v191_v6, 0  ;;  %v1537_v8 = vld [vmem:[%s2264_s1 + $0x8] sm:$0x3]  ;;  %s1690_s8 = smul.u32 288, %s1874_s30  ;;  %vm223_vm1 = vcmask 31744  }
  0x16   : > { %1689 = vmatpush.bf16.msra.mxu3 %v238_v1  ;;  %247 = vmatpush.bf16.msra.mxu0 %v238_v1  ;;  %v657_v9 = vsel %vm236_vm0, %v1537_v8, 0  ;;  %v1587_v10 = vld [vmem:[%s2264_s1 + $0xc] sm:$0x3]  ;;  %v1616_v11 = vld [vmem:[%s2264_s1 + $0xe] sm:$0x3]  ;;  %s1662_s29 = sshll.u32 %s1874_s30, 5 }
  0x17   : > { %s1890_s11 = scalar_lea.vmem %s2263_s0, %s1690_s8  ;;  %v1574_v12 = vld [vmem:[%s2264_s1 + $0xa] sm:$0x3]  ;;  %v934_v24 = vsel %vm236_vm0, %v1587_v10, 0  ;;  %v1017_v28 = vsel %vm236_vm0, %v1616_v11, 0  ;;  %v1653_v38 = vld [vmem:[%s2264_s1 + $0x10] sm:$0x3]  ;;  %s2138_s6 = scalar_lea.vmem %s2265_s2, %s1662_s29 }
  0x18   : > { %v1461_v13 = vld [vmem:[%s1890_s11 + $0x58] sm:$0xf]  ;;  %v1668_v14 = vld [vmem:[%s1890_s11 + $0x5c] sm:$0xf0]  ;;  %v1465_v15 = vld [vmem:[%s1890_s11 + $0x68] sm:$0xf] }
  0x19   : > { %500 = vmatpush.bf16.msrb.mxu2 %v491_v4  ;;  %311 = vmatpush.bf16.msrb.mxu1 %v302_v7  ;;  %v1462_v16 = vor.u32 %v1668_v14, %v1461_v13  ;;  %v1669_v17 = vld [vmem:[%s1890_s11 + $0x6c] sm:$0xf0]  ;;  %v1469_v18 = vld [vmem:[%s1890_s11 + $0x78] sm:$0xf]  ;;  %v1670_v19 = vld [vmem:[%s1890_s11 + $0x7c] sm:$0xf0] }
  0x1a   : > { %583 = vmatpush.bf16.msrb.mxu3 %v574_v5  ;;  %666 = vmatpush.bf16.msrb.mxu0 %v657_v9  ;;  %v1466_v20 = vor.u32 %v1669_v17, %v1465_v15  ;;  %v1470_v21 = vor.u32 %v1670_v19, %v1469_v18  ;;  %v1457_v22 = vld [vmem:[%s1890_s11 + $0x48] sm:$0xf]  ;;  %v1667_v23 = vld [vmem:[%s1890_s11 + $0x4c] sm:$0xf0]  ;;  %v333_v26 = vld [vmem:[%s1890_s11] sm:$0xf] }
  0x1b   : > { %1472 = vmatmul.msk.bf16.vlgmr.msra.gmra.mxu1 %vm223_vm1, %v1462_v16  ;;  %v1458_v25 = vor.u32 %v1667_v23, %v1457_v22  ;;  %v334_v27 = vld [vmem:[%s1890_s11 + $0x4] sm:$0x1]  ;;  %v851_v29 = vsel %vm236_vm0, %v1574_v12, 0  ;;  %v335_v30 = vld [vmem:[%s1890_s11 + $0x8] sm:$0xf]  ;;  %v353_v32 = vshrl.u32 %v333_v26, 16 }
  0x1c   : > { %1473 = vmatmul.msk.bf16.vlgmr.msra.gmra.mxu2 %vm223_vm1, %v1466_v20  ;;  %1474 = vmatmul.msk.bf16.vlgmr.msra.gmra.mxu3 %vm223_vm1, %v1470_v21  ;;  %v336_v31 = vld [vmem:[%s1890_s11 + $0xc] sm:$0x1]  ;;  %v356_v33 = vshll.u32 %v333_v26, 16  ;;  %v362_v34 = vshll.u32 %v334_v27, 16  ;;  %v367_v35 = vshrl.u32 %v335_v30, 16  ;;  %v370_v36 = vshll.u32 %v335_v30, 16 }
  0x1d   : > { %1471 = vmatmul.msk.bf16.vlgmr.msra.gmra.mxu0 %vm223_vm1, %v1458_v25  ;;  %v376_v37 = vshll.u32 %v336_v31, 16  ;;  %943 = vmatpush.bf16.msra.mxu2 %v934_v24  ;;  %vm349_vm2 = vsmask.f32 3328  ;;  %vm350_vm3 = vsmask.f32 7440  ;;  %v355_v39 = vrot.slane %v353_v32, 4 }
  0x1e   : > { %v358_v40 = vrot.slane %v356_v33, 5  ;;  %1026 = vmatpush.bf16.msra.mxu3 %v1017_v28  ;;  %860 = vmatpush.bf16.msra.mxu1 %v851_v29  ;;  %v369_v41 = vrot.slane %v367_v35, 4  ;;  %v372_v42 = vrot.slane %v370_v36, 5  ;;  %v364_v44 = vrot.slane %v362_v34, 5  ;;  %vm1924_vm4 = vmor %vm349_vm2, %vm350_vm3  ;;  %v337_v49 = vld [vmem:[%s1890_s11 + $0x10] sm:$0xf] }
  0x1f   : > { %v1211_v45 = vsel %vm236_vm0, %v1653_v38, 0  ;;  %v378_v48 = vrot.slane %v376_v37, 5  ;;  %v339_v50 = vld [vmem:[%s1890_s11 + $0x18] sm:$0xf]  ;;  %v1477_v51 = vld [vmem:[%s1890_s11] sm:$0xf] }
  0x20   : > { %v359_v43 = vor.u32 %v358_v40, %v355_v39  ;;  %v373_v47 = vor.u32 %v372_v42, %v369_v41  ;;  %1220 = vmatpush.bf16.msra.mxu0 %v1211_v45  ;;  %v381_v53 = vshrl.u32 %v337_v49, 16  ;;  %v384_v54 = vshll.u32 %v337_v49, 16  ;;  %v1663_v55 = vld [vmem:[%s1890_s11 + $0x4] sm:$0xf0]  ;;  %v1511_v60 = vld [vmem:[%s1890_s11 + $0x90] sm:$0xf] }
  0x21   : > { %v395_v57 = vshrl.u32 %v339_v50, 16  ;;  %v398_v58 = vshll.u32 %v339_v50, 16  ;;  %v1671_v61 = vld [vmem:[%s1890_s11 + $0x94] sm:$0xf0]  ;;  %v1675_v3 = vld [vmem:[%s1890_s11 + $0xdc] sm:$0xf0]  ;;  %v1478_v9 = vor.u32 %v1663_v55, %v1477_v51 }
  0x22   : > { %v360_v52 = vrot.slane %v359_v43, 4  ;;  %v374_v56 = vrot.slane %v373_v47, 4  ;;  %v383_v62 = vrot.slane %v381_v53, 4  ;;  %v386_v63 = vrot.slane %v384_v54, 5  ;;  %v1540_v2 = vld [vmem:[%s1890_s11 + $0xd8] sm:$0xf] }
  0x23   : > { %v397_v4 = vrot.slane %v395_v57, 4  ;;  %v400_v5 = vrot.slane %v398_v58, 5  ;;  %v338_v7 = vld [vmem:[%s1890_s11 + $0x14] sm:$0x1]  ;;  %v340_v8 = vld [vmem:[%s1890_s11 + $0x1c] sm:$0x1]  ;;  %v1512_v11 = vor.u32 %v1671_v61, %v1511_v60  ;;  %v1541_v12 = vor.u32 %v1675_v3, %v1540_v2 }
  0x24   : > { %v365_v59 = vsel %vm1924_vm4, %v360_v52, %v364_v44  ;;  %v379_v0 = vsel %vm1924_vm4, %v374_v56, %v378_v48  ;;  %v387_v13 = vor.u32 %v386_v63, %v383_v62  ;;  %v390_v14 = vshll.u32 %v338_v7, 16  ;;  %v341_v21 = vld [vmem:[%s1890_s11 + $0x20] sm:$0xf]  ;;  %v343_v22 = vld [vmem:[%s1890_s11 + $0x28] sm:$0xf]  ;;  %s169_s30 = sand.u32 1, %s1784_s13  }
  0x25   : > { %v466_v1 = vunpack.c.l.b16 %v365_v59  ;;  %v467_v6 = vunpack.c.l.b16 %v379_v0  ;;  %v401_v15 = vor.u32 %v400_v5, %v397_v4  ;;  %v404_v16 = vshll.u32 %v340_v8, 16  ;;  %v1481_v29 = vld [vmem:[%s1890_s11 + $0x10] sm:$0xf]  ;;  %v1664_v30 = vld [vmem:[%s1890_s11 + $0x14] sm:$0xf0]  ;;  %s1442_s7 = sshll.u32 %s169_s30, 1 }
  0x26   : > { %v388_v17 = vrot.slane %v387_v13, 4  ;;  %v392_v18 = vrot.slane %v390_v14, 5  ;;  %v409_v23 = vshrl.u32 %v341_v21, 16  ;;  %v412_v24 = vshll.u32 %v341_v21, 16  ;;  %v1515_v33 = vld [vmem:[%s1890_s11 + $0xa0] sm:$0xf] }
  0x27   : > { %v474_v10 = vpack.c.b16 %v467_v6, %v466_v1  ;;  %v402_v19 = vrot.slane %v401_v15, 4  ;;  %v406_v20 = vrot.slane %v404_v16, 5  ;;  %v423_v27 = vshrl.u32 %v343_v22, 16  ;;  %v1672_v34 = vld [vmem:[%s1890_s11 + $0xa4] sm:$0xf0]  ;;  %s2210_s8 = scalar_lea.vmem [#allocation2], %s1442_s7 }
  0x28   : > { %v393_v25 = vsel %vm1924_vm4, %v388_v17, %v392_v18  ;;  %v426_v28 = vshll.u32 %v343_v22, 16  ;;  %v1544_v35 = vld [vmem:[%s1890_s11 + $0xe8] sm:$0xf]  ;;  %v1676_v36 = vld [vmem:[%s1890_s11 + $0xec] sm:$0xf0]  ;;  %v411_v37 = vrot.slane %v409_v23, 4  ;;  %v1482_v43 = vor.u32 %v1664_v30, %v1481_v29 }
  0x29   : > { %v407_v26 = vsel %vm1924_vm4, %v402_v19, %v406_v20  ;;  %v468_v31 = vunpack.c.l.b16 %v393_v25  ;;  %v414_v38 = vrot.slane %v412_v24, 5  ;;  %v425_v39 = vrot.slane %v423_v27, 4  ;;  %v342_v41 = vld [vmem:[%s1890_s11 + $0x24] sm:$0x1]  ;;  %v344_v42 = vld [vmem:[%s1890_s11 + $0x2c] sm:$0x1] }
  0x2a   : > { %v469_v32 = vunpack.c.l.b16 %v407_v26  ;;  %v428_v40 = vrot.slane %v426_v28, 5  ;;  %v1516_v45 = vor.u32 %v1672_v34, %v1515_v33  ;;  %v1545_v47 = vor.u32 %v1676_v36, %v1544_v35  ;;  %v345_v52 = vld [vmem:[%s1890_s11 + $0x30] sm:$0xf]  ;;  %v347_v53 = vld [vmem:[%s1890_s11 + $0x38] sm:$0xf]  ;;  %s1351_s19 = sshll.u32 %s2210_s8, 4  ;;  %s1352_s19 = int_to_ptr.vmem [resolvable:$true] %s1351_s19 }
  0x2b   : > { %1491 = vmatmul.msk.bf16.vlgmr.msrb.gmra.mxu1 %vm223_vm1, %v1478_v9  ;;  %v415_v48 = vor.u32 %v414_v38, %v411_v37  ;;  %v418_v49 = vshll.u32 %v342_v41, 16  ;;  %v432_v51 = vshll.u32 %v344_v42, 16  ;;  %v437_v58 = vshrl.u32 %v345_v52, 16  ;;  %v346_v4 = vld [vmem:[%s1890_s11 + $0x34] sm:$0x1]  ;;  %s1336_s24 = scalar_lea.sflag [#allocation3], %s169_s30 }
  0x2c   : > { %1496 = vmatmul.msk.bf16.vlgmr.msrb.gmra.mxu2 %vm223_vm1, %v474_v10  ;;  %1525 = vmatmul.msk.bf16.vlgmr.msrb.gmra.mxu3 %vm223_vm1, %v1512_v11  ;;  %v475_v44 = vpack.c.b16 %v469_v32, %v468_v31  ;;  %v429_v50 = vor.u32 %v428_v40, %v425_v39  ;;  %v440_v59 = vshll.u32 %v345_v52, 16  ;;  %v451_v60 = vshrl.u32 %v347_v53, 16  ;;  %v348_v5 = vld [vmem:[%s1890_s11 + $0x3c] sm:$0x1]  ;;  %v1485_v6 = vld [vmem:[%s1890_s11 + $0x20] sm:$0xf] }
  0x2d   : > { %1554 = vmatmul.msk.bf16.vlgmr.msrb.gmra.mxu0 %vm223_vm1, %v1541_v12  ;;  %v416_v54 = vrot.slane %v415_v48, 4  ;;  %v420_v55 = vrot.slane %v418_v49, 5  ;;  %v434_v57 = vrot.slane %v432_v51, 5  ;;  %v454_v61 = vshll.u32 %v347_v53, 16  ;;  %v1665_v7 = vld [vmem:[%s1890_s11 + $0x24] sm:$0xf0] }
  0x2e   : > { %v430_v56 = vrot.slane %v429_v50, 4  ;;  %v439_v0 = vrot.slane %v437_v58, 4  ;;  %v442_v1 = vrot.slane %v440_v59, 5  ;;  %v453_v2 = vrot.slane %v451_v60, 4  ;;  %v1519_v10 = vld [vmem:[%s1890_s11 + $0xb0] sm:$0xf] }
  0x2f   : > { %v421_v62 = vsel %vm1924_vm4, %v416_v54, %v420_v55  ;;  %v456_v3 = vrot.slane %v454_v61, 5  ;;  %v1673_v11 = vld [vmem:[%s1890_s11 + $0xb4] sm:$0xf0]  ;;  %v1677_v13 = vld [vmem:[%s1890_s11 + $0xfc] sm:$0xf0]  ;;  %v446_v15 = vshll.u32 %v346_v4, 16  ;;  %v1486_v18 = vor.u32 %v1665_v7, %v1485_v6 }
  0x30   : > { %v435_v63 = vsel %vm1924_vm4, %v430_v56, %v434_v57  ;;  %v470_v8 = vunpack.c.l.b16 %v421_v62  ;;  %v1548_v12 = vld [vmem:[%s1890_s11 + $0xf8] sm:$0xf]  ;;  %v443_v14 = vor.u32 %v442_v1, %v439_v0  ;;  %v460_v17 = vshll.u32 %v348_v5, 16  ;;  %v1558_v26 = vld [vmem:[%s1890_s11 + $0x90] sm:$0xf]  ;;  %s1746_s16 = scalar_lea.hbm %s1745_s25, 2 }
  0x31   : > { %v471_v9 = vunpack.c.l.b16 %v435_v63  ;;  %v457_v16 = vor.u32 %v456_v3, %v453_v2  ;;  %v1520_v20 = vor.u32 %v1673_v11, %v1519_v10  ;;  %v1549_v21 = vor.u32 %v1677_v13, %v1548_v12  ;;  %v1560_v27 = vld [vmem:[%s1890_s11 + $0x98] sm:$0xf]  ;;  %v1637_v28 = vld [vmem:[%s1890_s11 + $0x8] sm:$0xf]  ;;  %v1639_v29 = vld [vmem:[%s1890_s11 + $0x10] sm:$0xf]  ;;  %p1747_p11 = scmp.ne.s32.totalorder %s1745_s25, %s1746_s16  ;;  %p1752_p1 = scmp.lt.s32.totalorder %s1750_s28, %s1746_s16 }
  0x32   : > { %v444_v22 = vrot.slane %v443_v14, 4  ;;  %v448_v23 = vrot.slane %v446_v15, 5  ;;  %v462_v25 = vrot.slane %v460_v17, 5  ;;  %v713_v32 = vshrl.u32 %v1558_v26, 16  ;;  %v1489_v40 = vld [vmem:[%s1890_s11 + $0x30] sm:$0xf] }
  0x33   : > { %v476_v19 = vpack.c.b16 %v471_v9, %v470_v8  ;;  %v458_v24 = vrot.slane %v457_v16, 4  ;;  %v716_v33 = vshll.u32 %v1558_v26, 16  ;;  %v727_v34 = vshrl.u32 %v1560_v27, 16  ;;  %v1666_v41 = vld [vmem:[%s1890_s11 + $0x34] sm:$0xf0]  ;;  %p1748_p12 = pnand %p1747_p11, %p1852_p5  ;;  %p1753_p2 = por %p1752_p1, %p1751_p0 }
  0x34   : > { %v449_v30 = vsel %vm1924_vm4, %v444_v22, %v448_v23  ;;  %v730_v35 = vshll.u32 %v1560_v27, 16  ;;  %v1073_v36 = vshrl.u32 %v1637_v28, 16  ;;  %v1076_v37 = vshll.u32 %v1637_v28, 16  ;;  %v1561_v52 = vld [vmem:[%s1890_s11 + $0x9c] sm:$0x1] }
  0x35   : > { %v463_v31 = vsel %vm1924_vm4, %v458_v24, %v462_v25  ;;  %v1087_v38 = vshrl.u32 %v1639_v29, 16  ;;  %v1090_v39 = vshll.u32 %v1639_v29, 16  ;;  %v472_v42 = vunpack.c.l.b16 %v449_v30  ;;  %v1638_v57 = vld [vmem:[%s1890_s11 + $0xc] sm:$0x1]  ;;  %v1640_v58 = vld [vmem:[%s1890_s11 + $0x14] sm:$0x1]  ;;  %p1749_p13 = pneg %p1748_p12 }
  0x36   : > { %v715_v48 = vrot.slane %v713_v32, 4  ;;  %v718_v49 = vrot.slane %v716_v33, 5  ;;  %v729_v50 = vrot.slane %v727_v34, 4  ;;  %v732_v51 = vrot.slane %v730_v35, 5  ;;  %v1552_v62 = vld [vmem:[%s1890_s11 + $0x108] sm:$0xf] }
  0x37   : > { %v1075_v53 = vrot.slane %v1073_v36, 4  ;;  %v1078_v54 = vrot.slane %v1076_v37, 5  ;;  %v1089_v55 = vrot.slane %v1087_v38, 4  ;;  %v1092_v56 = vrot.slane %v1090_v39, 5  ;;  %v1678_v63 = vld [vmem:[%s1890_s11 + $0x10c] sm:$0xf0]  ;;  %p1754_p3 = pnand %p1753_p2, %p1749_p13 }
  0x38   : > { %v1490_v59 = vor.u32 %v1666_v41, %v1489_v40  ;;  %v719_v0 = vor.u32 %v718_v49, %v715_v48  ;;  %v733_v2 = vor.u32 %v732_v51, %v729_v50  ;;  %v736_v3 = vshll.u32 %v1561_v52, 16  ;;  %v1562_v9 = vld [vmem:[%s1890_s11 + $0xa0] sm:$0xf]  ;;  %v1564_v10 = vld [vmem:[%s1890_s11 + $0xa8] sm:$0xf] }
  0x39   : > { %v1079_v4 = vor.u32 %v1078_v54, %v1075_v53  ;;  %v1082_v5 = vshll.u32 %v1638_v57, 16  ;;  %v1093_v6 = vor.u32 %v1092_v56, %v1089_v55  ;;  %v1096_v7 = vshll.u32 %v1640_v58, 16  ;;  %v1641_v23 = vld [vmem:[%s1890_s11 + $0x18] sm:$0xf]  ;;  %v1643_v24 = vld [vmem:[%s1890_s11 + $0x20] sm:$0xf] }
  0x3a   : > { %v1553_v8 = vor.u32 %v1678_v63, %v1552_v62  ;;  %v720_v11 = vrot.slane %v719_v0, 4  ;;  %v734_v13 = vrot.slane %v733_v2, 4  ;;  %v738_v14 = vrot.slane %v736_v3, 5  ;;  %v1563_v29 = vld [vmem:[%s1890_s11 + $0xa4] sm:$0x1] }
  0x3b   : > { %1492 = vmatmul.msk.bf16.gmra.mxu1 %vm223_vm1, %v1482_v43  ;;  %v473_v43 = vunpack.c.l.b16 %v463_v31  ;;  %v1080_v15 = vrot.slane %v1079_v4, 4  ;;  %v1084_v16 = vrot.slane %v1082_v5, 5  ;;  %v1094_v17 = vrot.slane %v1093_v6, 4  ;;  %v1565_v34 = vld [vmem:[%s1890_s11 + $0xac] sm:$0x1] }
  0x3c   : > { %1497 = vmatmul.msk.bf16.gmra.mxu2 %vm223_vm1, %v475_v44  ;;  %1526 = vmatmul.msk.bf16.gmra.mxu3 %vm223_vm1, %v1516_v45  ;;  %v1523_v44 = vld [vmem:[%s1890_s11 + $0xc0] sm:$0xf]  ;;  %v1674_v45 = vld [vmem:[%s1890_s11 + $0xc4] sm:$0xf0]  ;;  %v758_v22 = vshll.u32 %v1564_v10, 16  ;;  %v739_v26 = vsel %vm1924_vm4, %v734_v13, %v738_v14  ;;  %v1101_v35 = vshrl.u32 %v1641_v23, 16 }
  0x3d   : > { %1555 = vmatmul.msk.bf16.gmra.mxu0 %vm223_vm1, %v1545_v47  ;;  %v1559_v47 = vld [vmem:[%s1890_s11 + $0x94] sm:$0x1]  ;;  %v477_v60 = vpack.c.b16 %v473_v43, %v472_v42  ;;  %v1524_v61 = vor.u32 %v1674_v45, %v1523_v44  ;;  %v1085_v27 = vsel %vm1924_vm4, %v1080_v15, %v1084_v16  ;;  %v1104_v36 = vshll.u32 %v1641_v23, 16  ;;  %v1590_v41 = vld [vmem:[%s1890_s11 + $0x8] sm:$0xf] }
  0x3e   : > { %v722_v1 = vshll.u32 %v1559_v47, 16  ;;  %v760_v33 = vrot.slane %v758_v22, 5  ;;  %v1115_v37 = vshrl.u32 %v1643_v24, 16  ;;  %v1118_v38 = vshll.u32 %v1643_v24, 16  ;;  %v1679_v42 = vld [vmem:[%s1890_s11 + $0xc] sm:$0xf0] }
  0x3f   : > { %v827_v40 = vunpack.c.l.b16 %v739_v26  ;;  %v1186_v43 = vunpack.c.l.b16 %v1085_v27  ;;  %v1619_v45 = vld [vmem:[%s1890_s11 + $0x50] sm:$0xf]  ;;  %v1683_v47 = vld [vmem:[%s1890_s11 + $0x54] sm:$0xf0]  ;;  %v750_v49 = vshll.u32 %v1563_v29, 16  ;;  %v764_v51 = vshll.u32 %v1565_v34, 16 }
  0x40   : > { %v724_v12 = vrot.slane %v722_v1, 5  ;;  %v1103_v52 = vrot.slane %v1101_v35, 4  ;;  %v1106_v53 = vrot.slane %v1104_v36, 5  ;;  %v1117_v54 = vrot.slane %v1115_v37, 4  ;;  %v1642_v57 = vld [vmem:[%s1890_s11 + $0x1c] sm:$0x1] }
  0x41   : > { %v1120_v55 = vrot.slane %v1118_v38, 5  ;;  %v1644_v58 = vld [vmem:[%s1890_s11 + $0x24] sm:$0x1]  ;;  %v752_v63 = vrot.slane %v750_v49, 5  ;;  %v766_v1 = vrot.slane %v764_v51, 5  ;;  %v1110_v3 = vshll.u32 %v1642_v57, 16 }
  0x42   : > { %v725_v25 = vsel %vm1924_vm4, %v720_v11, %v724_v12  ;;  %v1107_v2 = vor.u32 %v1106_v53, %v1103_v52  ;;  %v1124_v5 = vshll.u32 %v1644_v58, 16  ;;  %v1566_v6 = vld [vmem:[%s1890_s11 + $0xb0] sm:$0xf]  ;;  %v1680_v29 = vld [vmem:[%s1890_s11 + $0x1c] sm:$0xf0]  ;;  %vm1258_vm5 = vcmask 60416  }
  0x43   : > { %v826_v39 = vunpack.c.l.b16 %v725_v25  ;;  %v1121_v4 = vor.u32 %v1120_v55, %v1117_v54  ;;  %v1112_v12 = vrot.slane %v1110_v3, 5  ;;  %v1647_v15 = vld [vmem:[%s1890_s11 + $0x30] sm:$0xf]  ;;  %v769_v16 = vshrl.u32 %v1566_v6, 16  ;;  %v1567_v35 = vld [vmem:[%s1890_s11 + $0xb4] sm:$0x1] }
  0x44   : > { %v1108_v11 = vrot.slane %v1107_v2, 4  ;;  %v1126_v14 = vrot.slane %v1124_v5, 5  ;;  %v1143_v22 = vshrl.u32 %v1647_v15, 16  ;;  %v1146_v23 = vshll.u32 %v1647_v15, 16  ;;  %v1569_v36 = vld [vmem:[%s1890_s11 + $0xbc] sm:$0x1] }
  0x45   : > { %v834_v56 = vpack.c.b16 %v827_v40, %v826_v39  ;;  %v1122_v13 = vrot.slane %v1121_v4, 4  ;;  %v1684_v39 = vld [vmem:[%s1890_s11 + $0x64] sm:$0xf0]  ;;  %v778_v49 = vshll.u32 %v1567_v35, 16  ;;  %v792_v51 = vshll.u32 %v1569_v36, 16 }
  0x46   : > { %v1113_v26 = vsel %vm1924_vm4, %v1108_v11, %v1112_v12  ;;  %v1570_v3 = vld [vmem:[%s1890_s11 + $0xc0] sm:$0xf]  ;;  %v1572_v4 = vld [vmem:[%s1890_s11 + $0xc8] sm:$0xf]  ;;  %vm1267_vm6 = vcmask 64512   ;;  %vm1327_vm7 = vcmask 57344  }
  0x47   : > { %v1127_v27 = vsel %vm1924_vm4, %v1122_v13, %v1126_v14  ;;  %v1188_v40 = vunpack.c.l.b16 %v1113_v26  ;;  %v811_v11 = vshrl.u32 %v1572_v4, 16  ;;  %v814_v12 = vshll.u32 %v1572_v4, 16  ;;  %v1631_v4 = vld [vmem:[%s1890_s11 + $0x80] sm:$0xf] }
  0x4b   : > { %1493 = vmatmul.msk.bf16.gmra.mxu1 %vm223_vm1, %v1486_v18  ;;  %v1098_v18 = vrot.slane %v1096_v7, 5  ;;  %v1568_v7 = vld [vmem:[%s1890_s11 + $0xb8] sm:$0xf] }
  0x4c   : > { %1498 = vmatmul.msk.bf16.gmra.mxu2 %vm223_vm1, %v476_v19  ;;  %1527 = vmatmul.msk.bf16.gmra.mxu3 %vm223_vm1, %v1520_v20  ;;  %v741_v19 = vshrl.u32 %v1562_v9, 16  ;;  %v744_v20 = vshll.u32 %v1562_v9, 16 }
  0x4d   : > { %1556 = vmatmul.msk.bf16.gmra.mxu0 %vm223_vm1, %v1549_v21  ;;  %v755_v21 = vshrl.u32 %v1564_v10, 16  ;;  %v1099_v28 = vsel %vm1924_vm4, %v1094_v17, %v1098_v18  ;;  %v1645_v10 = vld [vmem:[%s1890_s11 + $0x28] sm:$0xf]  ;;  %v772_v17 = vshll.u32 %v1566_v6, 16  ;;  %v783_v18 = vshrl.u32 %v1568_v7, 16 }
  0x4e   : > { %v743_v30 = vrot.slane %v741_v19, 4  ;;  %v746_v31 = vrot.slane %v744_v20, 5  ;;  %v1187_v44 = vunpack.c.l.b16 %v1099_v28  ;;  %v786_v19 = vshll.u32 %v1568_v7, 16  ;;  %v1594_v28 = vld [vmem:[%s1890_s11 + $0x18] sm:$0xf] }
  0x4f   : > { %v757_v32 = vrot.slane %v755_v21, 4  ;;  %v1129_v20 = vshrl.u32 %v1645_v10, 16  ;;  %v1132_v21 = vshll.u32 %v1645_v10, 16  ;;  %v1595_v52 = vor.u32 %v1680_v29, %v1594_v28  ;;  %v1649_v7 = vld [vmem:[%s1890_s11 + $0x38] sm:$0xf] }
  0x50   : > { %v747_v48 = vor.u32 %v746_v31, %v743_v30  ;;  %v1623_v30 = vld [vmem:[%s1890_s11 + $0x60] sm:$0xf]  ;;  %v771_v31 = vrot.slane %v769_v16, 4  ;;  %v788_v34 = vrot.slane %v786_v19, 5  ;;  %v800_v10 = vshll.u32 %v1570_v3, 16 }
  0x51   : > { %v761_v50 = vor.u32 %v760_v33, %v757_v32  ;;  %v774_v32 = vrot.slane %v772_v17, 5  ;;  %v785_v33 = vrot.slane %v783_v18, 4  ;;  %v1131_v37 = vrot.slane %v1129_v20, 4 }
  0x52   : > { %v748_v62 = vrot.slane %v747_v48, 4  ;;  %v1134_v38 = vrot.slane %v1132_v21, 5  ;;  %v1624_v53 = vor.u32 %v1684_v39, %v1623_v30  ;;  %v1157_v15 = vshrl.u32 %v1649_v7, 16  ;;  %v1598_v21 = vld [vmem:[%s1890_s11 + $0x28] sm:$0xf] }
  0x53   : > { %v762_v0 = vrot.slane %v761_v50, 4  ;;  %v775_v48 = vor.u32 %v774_v32, %v771_v31  ;;  %v789_v50 = vor.u32 %v788_v34, %v785_v33  ;;  %v1160_v16 = vshll.u32 %v1649_v7, 16  ;;  %v1571_v31 = vld [vmem:[%s1890_s11 + $0xc4] sm:$0x1]  ;;  %v1573_v32 = vld [vmem:[%s1890_s11 + $0xcc] sm:$0x1] }
  0x54   : > { %v1135_v54 = vor.u32 %v1134_v38, %v1131_v37  ;;  %v802_v26 = vrot.slane %v800_v10, 5  ;;  %v816_v28 = vrot.slane %v814_v12, 5  ;;  %v1159_v33 = vrot.slane %v1157_v15, 4 }
  0x55   : > { %v767_v9 = vsel %vm1924_vm4, %v762_v0, %v766_v1  ;;  %v1162_v34 = vrot.slane %v1160_v16, 5 }
  0x56   : > { %v829_v25 = vunpack.c.l.b16 %v767_v9  ;;  %v797_v9 = vshrl.u32 %v1570_v3, 16  ;;  %v1682_v3 = vld [vmem:[%s1890_s11 + $0x3c] sm:$0xf0] }
  0x5b   : > { %1494 = vmatmul.msk.bf16.gmra.mxu1 %vm223_vm1, %v1490_v59  ;;  %v1591_v59 = vor.u32 %v1679_v42, %v1590_v41  ;;  %v1189_v41 = vunpack.c.l.b16 %v1127_v27  ;;  %v1646_v42 = vld [vmem:[%s1890_s11 + $0x2c] sm:$0x1]  ;;  %v813_v27 = vrot.slane %v811_v11, 4 }
  0x5c   : > { %1499 = vmatmul.msk.bf16.gmra.mxu2 %vm223_vm1, %v477_v60  ;;  %1528 = vmatmul.msk.bf16.gmra.mxu3 %vm223_vm1, %v1524_v61  ;;  %v1620_v60 = vor.u32 %v1683_v47, %v1619_v45  ;;  %v1194_v61 = vpack.c.b16 %v1187_v44, %v1186_v43  ;;  %v1145_v43 = vrot.slane %v1143_v22, 4  ;;  %v1148_v44 = vrot.slane %v1146_v23, 5  ;;  %v1648_v47 = vld [vmem:[%s1890_s11 + $0x34] sm:$0x1]  ;;  %v1681_v22 = vld [vmem:[%s1890_s11 + $0x2c] sm:$0xf0] }
  0x5d   : > { %1557 = vmatmul.msk.bf16.gmra.mxu0 %vm223_vm1, %v1553_v8  ;;  %v753_v8 = vsel %vm1924_vm4, %v748_v62, %v752_v63  ;;  %v1138_v55 = vshll.u32 %v1646_v42, 16  ;;  %v1152_v58 = vshll.u32 %v1648_v47, 16  ;;  %v794_v62 = vrot.slane %v792_v51, 5  ;;  %v1627_v23 = vld [vmem:[%s1890_s11 + $0x70] sm:$0xf] }
  0x5e   : > { %v828_v24 = vunpack.c.l.b16 %v753_v8  ;;  %v1149_v57 = vor.u32 %v1148_v44, %v1145_v43  ;;  %v1136_v63 = vrot.slane %v1135_v54, 4  ;;  %v1651_v8 = vld [vmem:[%s1890_s11 + $0x40] sm:$0xf]  ;;  %v1599_v38 = vor.u32 %v1681_v22, %v1598_v21 }
  0x5f   : > { %v1140_v0 = vrot.slane %v1138_v55, 5  ;;  %v1154_v2 = vrot.slane %v1152_v58, 5  ;;  %v1171_v17 = vshrl.u32 %v1651_v8, 16  ;;  %v1174_v18 = vshll.u32 %v1651_v8, 16 }
  0x60   : > { %v835_v45 = vpack.c.b16 %v829_v25, %v828_v24  ;;  %v1150_v1 = vrot.slane %v1149_v57, 4  ;;  %v1685_v24 = vld [vmem:[%s1890_s11 + $0x74] sm:$0xf0]  ;;  %v799_v25 = vrot.slane %v797_v9, 4  ;;  %v806_v43 = vshll.u32 %v1571_v31, 16 }
  0x61   : > { %v1141_v13 = vsel %vm1924_vm4, %v1136_v63, %v1140_v0  ;;  %v1173_v35 = vrot.slane %v1171_v17, 4  ;;  %v1176_v36 = vrot.slane %v1174_v18, 5  ;;  %v1628_v39 = vor.u32 %v1685_v24, %v1627_v23 }
  0x62   : > { %v1155_v14 = vsel %vm1924_vm4, %v1150_v1, %v1154_v2  ;;  %v1190_v29 = vunpack.c.l.b16 %v1141_v13  ;;  %v803_v42 = vor.u32 %v802_v26, %v799_v25  ;;  %v817_v44 = vor.u32 %v816_v28, %v813_v27  ;;  %v1602_v2 = vld [vmem:[%s1890_s11 + $0x38] sm:$0xf] }
  0x63   : > { %v1191_v30 = vunpack.c.l.b16 %v1155_v14  ;;  %v1603_v10 = vor.u32 %v1682_v3, %v1602_v2 }
  0x64   : > { %v818_v54 = vrot.slane %v817_v44, 4 }
  0x65   : > { %v1196_v47 = vpack.c.b16 %v1191_v30, %v1190_v29 }
  0x6b   : > { %1575 = vmatmul.msk.bf16.vlgmr.msra.gmra.mxu1 %vm223_vm1, %v834_v56  ;;  %v1195_v56 = vpack.c.b16 %v1189_v41, %v1188_v40  ;;  %v1650_v40 = vld [vmem:[%s1890_s11 + $0x3c] sm:$0x1]  ;;  %v1652_v41 = vld [vmem:[%s1890_s11 + $0x44] sm:$0x1] }
  0x6c   : > { %1604 = vmatmul.msk.bf16.vlgmr.msra.gmra.mxu2 %vm223_vm1, %v1591_v59  ;;  %1633 = vmatmul.msk.bf16.vlgmr.msra.gmra.mxu3 %vm223_vm1, %v1620_v60  ;;  %v776_v59 = vrot.slane %v775_v48, 4  ;;  %v780_v60 = vrot.slane %v778_v49, 5  ;;  %v1163_v48 = vor.u32 %v1162_v34, %v1159_v33  ;;  %v1166_v49 = vshll.u32 %v1650_v40, 16 }
  0x6d   : > { %1654 = vmatmul.msk.bf16.vlgmr.msra.gmra.mxu0 %vm223_vm1, %v1194_v61  ;;  %v790_v61 = vrot.slane %v789_v50, 4  ;;  %v1177_v50 = vor.u32 %v1176_v36, %v1173_v35  ;;  %v1180_v51 = vshll.u32 %v1652_v41, 16 }
  0x6e   : > { %v781_v5 = vsel %vm1924_vm4, %v776_v59, %v780_v60  ;;  %v1168_v57 = vrot.slane %v1166_v49, 5 }
  0x6f   : > { %v795_v6 = vsel %vm1924_vm4, %v790_v61, %v794_v62  ;;  %v830_v19 = vunpack.c.l.b16 %v781_v5  ;;  %v1178_v58 = vrot.slane %v1177_v50, 4  ;;  %v1182_v59 = vrot.slane %v1180_v51, 5  ;;  %v1686_v5 = vld [vmem:[%s1890_s11 + $0x84] sm:$0xf0] }
  0x70   : > { %v831_v20 = vunpack.c.l.b16 %v795_v6  ;;  %v1632_v11 = vor.u32 %v1686_v5, %v1631_v4 }
  0x71   : > { %v1183_v63 = vsel %vm1924_vm4, %v1178_v58, %v1182_v59 }
  0x72   : > { %v836_v37 = vpack.c.b16 %v831_v20, %v830_v19  ;;  %v1193_v7 = vunpack.c.l.b16 %v1183_v63 }
  0x7b   : > { %1576 = vmatmul.msk.bf16.gmra.mxu1 %vm223_vm1, %v835_v45  ;;  %v820_v45 = vshll.u32 %v1573_v32, 16 }
  0x7c   : > { %1605 = vmatmul.msk.bf16.gmra.mxu2 %vm223_vm1, %v1595_v52  ;;  %1634 = vmatmul.msk.bf16.gmra.mxu3 %vm223_vm1, %v1624_v53  ;;  %v804_v52 = vrot.slane %v803_v42, 4  ;;  %v808_v53 = vrot.slane %v806_v43, 5 }
  0x7d   : > { %1655 = vmatmul.msk.bf16.gmra.mxu0 %vm223_vm1, %v1195_v56  ;;  %v822_v55 = vrot.slane %v820_v45, 5  ;;  %v1164_v56 = vrot.slane %v1163_v48, 4 }
  0x7e   : > { %v809_v60 = vsel %vm1924_vm4, %v804_v52, %v808_v53 }
  0x7f   : > { %v823_v61 = vsel %vm1924_vm4, %v818_v54, %v822_v55  ;;  %v1169_v62 = vsel %vm1924_vm4, %v1164_v56, %v1168_v57  ;;  %v832_v0 = vunpack.c.l.b16 %v809_v60 }
  0x80   : > { %v833_v1 = vunpack.c.l.b16 %v823_v61  ;;  %v1192_v6 = vunpack.c.l.b16 %v1169_v62 }
  0x82   : > { %v837_v8 = vpack.c.b16 %v833_v1, %v832_v0  ;;  %v1197_v12 = vpack.c.b16 %v1193_v7, %v1192_v6 }
  0x8b   : > { %1577 = vmatmul.msk.bf16.gmra.mxu1 %vm223_vm1, %v836_v37 }
  0x8c   : > { %1606 = vmatmul.msk.bf16.gmra.mxu2 %vm223_vm1, %v1599_v38  ;;  %1635 = vmatmul.msk.bf16.gmra.mxu3 %vm223_vm1, %v1628_v39 }
  0x8d   : > { %1656 = vmatmul.msk.bf16.gmra.mxu0 %vm223_vm1, %v1196_v47 }
  0x98   : > { %v254_v9 = vpop.f32.mrf.mxu1 }
  0x9a   : > { %v249_v13 = vpop.f32.mrf.mxu0 }
  0x9b   : > { %1578 = vmatmul.msk.bf16.gmra.mxu1 %vm223_vm1, %v837_v8 }
  0x9c   : > { %1607 = vmatmul.msk.bf16.gmra.mxu2 %vm223_vm1, %v1603_v10  ;;  %1636 = vmatmul.msk.bf16.gmra.mxu3 %vm223_vm1, %v1632_v11 }
  0x9d   : > { %1657 = vmatmul.msk.bf16.gmra.mxu0 %vm223_vm1, %v1197_v12 }
  0x9f   : > { %v2092_v46 = vpop.f32.mrf.mxu2  ;;  %v2094_v14 = vpop.f32.mrf.mxu3 }
  0xa0   : > { %v2096_v15 = vpop.f32.mrf.mxu1 }
  0xa2   : > { %v251_v16 = vpop.f32.mrf.mxu0 }
  0xa7   : > { %v2098_v17 = vpop.f32.mrf.mxu2  ;;  %v2100_v18 = vpop.f32.mrf.mxu3 }
  0xa8   : > { %v313_v19 = vpop.f32.mrf.mxu1 }
  0xa9   : > { %v314_v49 = vadd.f32 %v313_v19, %v249_v13 }
  0xaa   : > { %v668_v20 = vpop.f32.mrf.mxu0 }
  0xaf   : > { %v502_v21 = vpop.f32.mrf.mxu2  ;;  %v585_v22 = vpop.f32.mrf.mxu3 }
  0xb0   : > { %v315_v23 = vpop.f32.mrf.mxu1  ;;  %v522_v51 = vadd.f32 %v502_v21, %v314_v49 }
  0xb1   : > { %v316_v56 = vadd.f32 %v315_v23, %v251_v16 }
  0xb2   : > { %v670_v24 = vpop.f32.mrf.mxu0  ;;  %v605_v54 = vadd.f32 %v585_v22, %v522_v51 }
  0xb4   : > { %v688_v59 = vadd.f32 %v668_v20, %v605_v54 }
  0xb7   : > { %v504_v25 = vpop.f32.mrf.mxu2  ;;  %v587_v26 = vpop.f32.mrf.mxu3 }
  0xb8   : > { %v318_v27 = vpop.f32.mrf.mxu1  ;;  %v523_v58 = vadd.f32 %v504_v25, %v316_v56 }
  0xb9   : > { %v319_v2 = vadd.f32 %v318_v27, %v254_v9 }
  0xba   : > { %v673_v28 = vpop.f32.mrf.mxu0  ;;  %v606_v63 = vadd.f32 %v587_v26, %v523_v58 }
  0xbc   : > { %v689_v7 = vadd.f32 %v670_v24, %v606_v63 }
  0xbf   : > { %v507_v29 = vpop.f32.mrf.mxu2  ;;  %v590_v30 = vpop.f32.mrf.mxu3 }
  0xc0   : > { %v320_v31 = vpop.f32.mrf.mxu1  ;;  %v524_v5 = vadd.f32 %v507_v29, %v319_v2 }
  0xc1   : > { %v321_v19 = vadd.f32 %v320_v31, %v2096_v15 }
  0xc2   : > { %v2102_v32 = vpop.f32.mrf.mxu0  ;;  %v607_v12 = vadd.f32 %v590_v30, %v524_v5 }
  0xc4   : > { %v690_v24 = vadd.f32 %v673_v28, %v607_v12 }
  0xc7   : > { %v509_v33 = vpop.f32.mrf.mxu2  ;;  %v592_v34 = vpop.f32.mrf.mxu3 }
  0xc8   : > { %v323_v35 = vpop.f32.mrf.mxu1  ;;  %v525_v22 = vadd.f32 %v509_v33, %v321_v19 }
  0xc9   : > { %v324_v15 = vadd.f32 %v323_v35, %v2092_v46 }
  0xca   : > { %v2104_v36 = vpop.f32.mrf.mxu0  ;;  %v608_v49 = vadd.f32 %v592_v34, %v525_v22 }
  0xcc   : > { %v691_v28 = vadd.f32 %v2102_v32, %v608_v49 }
  0xcf   : > { %v512_v37 = vpop.f32.mrf.mxu2  ;;  %v2106_v38 = vpop.f32.mrf.mxu3 }
  0xd0   : > { %v2108_v39 = vpop.f32.mrf.mxu1  ;;  %v526_v33 = vadd.f32 %v512_v37, %v324_v15 }
  0xd1   : > { %v326_v37 = vadd.f32 %v2108_v39, %v2098_v17 }
  0xd2   : > { %v2110_v40 = vpop.f32.mrf.mxu0 }
  0xd7   : > { %v2112_v41 = vpop.f32.mrf.mxu2  ;;  %v2114_v42 = vpop.f32.mrf.mxu3 }
  0xd8   : > { %v2116_v43 = vpop.f32.mrf.mxu1 }
  0xda   : > { %v2118_v44 = vpop.f32.mrf.mxu0 }
  0xdf   : > { %v2120_v45 = vpop.f32.mrf.mxu2  ;;  %v2122_v47 = vpop.f32.mrf.mxu3 }
  0xe0   : > { %v2124_v48 = vpop.f32.mrf.mxu1 }
  0xe2   : > { %v2126_v50 = vpop.f32.mrf.mxu0 }
  0xe7   : > { %v2128_v52 = vpop.f32.mrf.mxu2  ;;  %v2130_v53 = vpop.f32.mrf.mxu3 }
  0xe8   : > { %v862_v55 = vpop.f32.mrf.mxu1 }
  0xe9   : > { %v882_v60 = vadd.f32 %v862_v55, %v688_v59  ;;  %v609_v59 = vadd.f32 %v2106_v38, %v526_v33  ;;  %v527_v38 = vadd.f32 %v2112_v41, %v326_v37 }
  0xea   : > { %v1222_v57 = vpop.f32.mrf.mxu0 }
  0xef   : > { %v945_v61 = vpop.f32.mrf.mxu2  ;;  %v1028_v62 = vpop.f32.mrf.mxu3 }
  0xf0   : > { %v965_v0 = vadd.f32 %v945_v61, %v882_v60  ;;  %v864_v1 = vpop.f32.mrf.mxu1 }
  0xf1   : > { %v883_v10 = vadd.f32 %v864_v1, %v689_v7  ;;  %v692_v1 = vadd.f32 %v2104_v36, %v609_v59  ;;  %v329_v36 = vadd.f32 %v2116_v43, %v2094_v14 }
  0xf2   : > { %v1048_v3 = vadd.f32 %v1028_v62, %v965_v0  ;;  %v1224_v4 = vpop.f32.mrf.mxu0 }
  0xf3   : > { %v528_v12 = vadd.f32 %v2120_v45, %v329_v36 }
  0xf4   : > { %v2133_v6 = vadd.f32 %v1222_v57, %v1048_v3 }
  0xf5   : > { %v611_v14 = vadd.f32 %v2122_v47, %v528_v12 }
  0xf6   : > { %v1250_v8 = vpack.c.bf16 %v2133_v6, %v2133_v6  ;;  %v1268_v32 = vsel %vm1267_vm6, %v2133_v6, 0.0 }
  0xf7   : > { %v947_v11 = vpop.f32.mrf.mxu2  ;;  %v1030_v9 = vpop.f32.mrf.mxu3  ;;  %v694_v49 = vadd.f32 %v2118_v44, %v611_v14 }
  0xf8   : > { %1259 = vst.msk [vmem:[%s2138_s6] sm:$0xf] %vm1258_vm5, %v1250_v8  ;;  %v966_v13 = vadd.f32 %v947_v11, %v883_v10  ;;  %v867_v16 = vpop.f32.mrf.mxu1  ;;  %v610_v10 = vadd.f32 %v2114_v42, %v527_v38 }
  0xf9   : > { %v884_v26 = vadd.f32 %v867_v16, %v690_v24 }
  0xfa   : > { %v1049_v20 = vadd.f32 %v1030_v9, %v966_v13  ;;  %v1227_v21 = vpop.f32.mrf.mxu0  ;;  %v693_v16 = vadd.f32 %v2110_v40, %v610_v10  ;;  %v331_v40 = vadd.f32 %v2124_v48, %v2100_v18 }
  0xfc   : > { %v2145_v23 = vadd.f32 %v1224_v4, %v1049_v20 }
  0xfe   : > { %v1251_v25 = vpack.c.bf16 %v2145_v23, %v2145_v23  ;;  %v1269_v60 = vsel %vm1267_vm6, %v2145_v23, 0.0 }
  0xff   : > { %v950_v27 = vpop.f32.mrf.mxu2  ;;  %v1033_v29 = vpop.f32.mrf.mxu3  ;;  %v1270_v63 = vadd.f32 %v1269_v60, %v1268_v32 }
 0x100   : > { %1260 = vst.msk [vmem:[%s2138_s6 + $0x4] sm:$0xf] %vm1258_vm5, %v1251_v25  ;;  %v967_v30 = vadd.f32 %v950_v27, %v884_v26  ;;  %v869_v51 = vpop.f32.mrf.mxu1  ;;  %v529_v27 = vadd.f32 %v2128_v52, %v331_v40 }
 0x101   : > { %v885_v57 = vadd.f32 %v869_v51, %v691_v28 }
 0x102   : > { %v1050_v31 = vadd.f32 %v1033_v29, %v967_v30  ;;  %v1229_v54 = vpop.f32.mrf.mxu0  ;;  %v612_v33 = vadd.f32 %v2130_v53, %v529_v27 }
 0x104   : > { %v2152_v55 = vadd.f32 %v1227_v21, %v1050_v31  ;;  %v695_v44 = vadd.f32 %v2126_v50, %v612_v33 }
 0x106   : > { %v1252_v56 = vpack.c.bf16 %v2152_v55, %v2152_v55  ;;  %v1271_v61 = vsel %vm1267_vm6, %v2152_v55, 0.0 }
 0x107   : > { %v952_v34 = vpop.f32.mrf.mxu2  ;;  %v1035_v58 = vpop.f32.mrf.mxu3  ;;  %v1272_v3 = vadd.f32 %v1271_v61, %v1270_v63 }
 0x108   : > { %1261 = vst.msk [vmem:[%s2138_s6 + $0x8] sm:$0xf] %vm1258_vm5, %v1252_v56  ;;  %v968_v46 = vadd.f32 %v952_v34, %v885_v57  ;;  %v872_v35 = vpop.f32.mrf.mxu1 }
 0x109   : > { %v886_v4 = vadd.f32 %v872_v35, %v692_v1 }
 0x10a   : > { %v1051_v62 = vadd.f32 %v1035_v58, %v968_v46  ;;  %v1232_v2 = vpop.f32.mrf.mxu0 }
 0x10c   : > { %v2169_v0 = vadd.f32 %v1229_v54, %v1051_v62 }
 0x10e   : > { %v1253_v17 = vpack.c.bf16 %v2169_v0, %v2169_v0  ;;  %v1273_v39 = vsel %vm1267_vm6, %v2169_v0, 0.0 }
 0x10f   : > { %v1274_v5 = vadd.f32 %v1273_v39, %v1272_v3  ;;  %v955_v7 = vpop.f32.mrf.mxu2  ;;  %v1038_v8 = vpop.f32.mrf.mxu3 }
 0x110   : > { %1262 = vst.msk [vmem:[%s2138_s6 + $0xc] sm:$0xf] %vm1258_vm5, %v1253_v17  ;;  %v969_v41 = vadd.f32 %v955_v7, %v886_v4  ;;  %v874_v11 = vpop.f32.mrf.mxu1 }
 0x111   : > { %v887_v20 = vadd.f32 %v874_v11, %v693_v16 }
 0x112   : > { %v1052_v9 = vadd.f32 %v1038_v8, %v969_v41  ;;  %v1234_v21 = vpop.f32.mrf.mxu0 }
 0x114   : > { %v2182_v13 = vadd.f32 %v1232_v2, %v1052_v9 }
 0x116   : > { %v1254_v19 = vpack.c.bf16 %v2182_v13, %v2182_v13  ;;  %v1275_v42 = vsel %vm1267_vm6, %v2182_v13, 0.0 }
 0x117   : > { %v1276_v22 = vadd.f32 %v1275_v42, %v1274_v5  ;;  %v957_v24 = vpop.f32.mrf.mxu2  ;;  %v1040_v25 = vpop.f32.mrf.mxu3 }
 0x118   : > { %1263 = vst.msk [vmem:[%s2138_s6 + $0x10] sm:$0xf] %vm1258_vm5, %v1254_v19  ;;  %v970_v43 = vadd.f32 %v957_v24, %v887_v20  ;;  %v877_v45 = vpop.f32.mrf.mxu1 }
 0x119   : > { %v888_v15 = vadd.f32 %v877_v45, %v694_v49 }
 0x11a   : > { %v1053_v26 = vadd.f32 %v1040_v25, %v970_v43  ;;  %v1237_v18 = vpop.f32.mrf.mxu0 }
 0x11c   : > { %v1247_v29 = vadd.f32 %v1234_v21, %v1053_v26 }
 0x11e   : > { %v1255_v30 = vpack.c.bf16 %v1247_v29, %v1247_v29  ;;  %v1277_v51 = vsel %vm1267_vm6, %v1247_v29, 0.0 }
 0x11f   : > { %v1278_v31 = vadd.f32 %v1277_v51, %v1276_v22  ;;  %v960_v47 = vpop.f32.mrf.mxu2  ;;  %v1043_v54 = vpop.f32.mrf.mxu3 }
 0x120   : > { %1264 = vst.msk [vmem:[%s2138_s6 + $0x14] sm:$0xf] %vm1258_vm5, %v1255_v30  ;;  %v971_v28 = vadd.f32 %v960_v47, %v888_v15  ;;  %v879_v56 = vpop.f32.mrf.mxu1 }
 0x121   : > { %v889_v58 = vadd.f32 %v879_v56, %v695_v44 }
 0x122   : > { %v1054_v48 = vadd.f32 %v1043_v54, %v971_v28  ;;  %v1239_v37 = vpop.f32.mrf.mxu0 }
 0x124   : > { %v1248_v52 = vadd.f32 %v1237_v18, %v1054_v48 }
 0x126   : > { %v1256_v57 = vpack.c.bf16 %v1248_v52, %v1248_v52  ;;  %v1279_v34 = vsel %vm1267_vm6, %v1248_v52, 0.0 }
 0x127   : > { %v1280_v59 = vadd.f32 %v1279_v34, %v1278_v31  ;;  %v962_v60 = vpop.f32.mrf.mxu2  ;;  %v1045_v46 = vpop.f32.mrf.mxu3 }
 0x128   : > { %1265 = vst.msk [vmem:[%s2138_s6 + $0x18] sm:$0xf] %vm1258_vm5, %v1256_v57  ;;  %v972_v53 = vadd.f32 %v962_v60, %v889_v58 }
 0x12a   : > { %v1055_v35 = vadd.f32 %v1045_v46, %v972_v53 }
 0x12c   : > { %v1249_v32 = vadd.f32 %v1239_v37, %v1055_v35 }
 0x12e   : > { %v1257_v61 = vpack.c.bf16 %v1249_v32, %v1249_v32  ;;  %v1281_v62 = vsel %vm1267_vm6, %v1249_v32, 0.0 }
 0x12f   : > { %v1282_v63 = vadd.f32 %v1281_v62, %v1280_v59 }
 0x130   : > { %1266 = vst.msk [vmem:[%s2138_s6 + $0x1c] sm:$0xf] %vm1258_vm5, %v1257_v61 }
 0x131   : > { %v1283_v50 = vrot.slane %v1282_v63, 4 }
 0x133   : > { %v1284_v38 = vadd.f32 %v1283_v50, %v1282_v63 }
 0x135   : > { %v1285_v1 = vrot.slane %v1284_v38, 2 }
 0x137   : > { %v1286_v2 = vadd.f32 %v1285_v1, %v1284_v38 }
 0x139   : > { %v1287_v3 = vrot.slane %v1286_v2, 1 }
 0x13b   : > { %v1288_v17 = vadd.f32 %v1287_v3, %v1286_v2 }
 0x13d   : > { %v1289_v39 = vmul.f32 0.015625, %v1288_v17  ;;  %1328 = vst.msk [vmem:[%s2210_s8] sm:$0x1] %vm1327_vm7, %v1288_v17 }
 0x13f   : > { %v1290_v4 = vsub.f32 %v2133_v6, %v1289_v39  ;;  %v1291_v5 = vsub.f32 %v2145_v23, %v1289_v39  ;;  %v1292_v7 = vsub.f32 %v2152_v55, %v1289_v39  ;;  %v1293_v8 = vsub.f32 %v2169_v0, %v1289_v39 }
 0x140   : > { %v1294_v10 = vsub.f32 %v2182_v13, %v1289_v39  ;;  %v1295_v41 = vsub.f32 %v1247_v29, %v1289_v39  ;;  %v1296_v11 = vsub.f32 %v1248_v52, %v1289_v39  ;;  %v1297_v36 = vsub.f32 %v1249_v32, %v1289_v39 }
 0x141   : > { %v1298_v9 = vmul.f32 %v1290_v4, %v1290_v4  ;;  %v1299_v12 = vmul.f32 %v1291_v5, %v1291_v5  ;;  %v1300_v16 = vmul.f32 %v1292_v7, %v1292_v7  ;;  %v1301_v19 = vmul.f32 %v1293_v8, %v1293_v8 }
 0x142   : > { %v1302_v21 = vmul.f32 %v1294_v10, %v1294_v10  ;;  %v1303_v0 = vmul.f32 %v1295_v41, %v1295_v41  ;;  %v1304_v24 = vmul.f32 %v1296_v11, %v1296_v11  ;;  %v1305_v43 = vmul.f32 %v1297_v36, %v1297_v36 }
 0x143   : > { %v1306_v42 = vsel %vm1267_vm6, %v1298_v9, 0.0  ;;  %v1307_v20 = vsel %vm1267_vm6, %v1299_v12, 0.0  ;;  %v1309_v23 = vsel %vm1267_vm6, %v1300_v16, 0.0  ;;  %v1311_v13 = vsel %vm1267_vm6, %v1301_v19, 0.0 }
 0x144   : > { %v1308_v6 = vadd.f32 %v1307_v20, %v1306_v42  ;;  %v1313_v25 = vsel %vm1267_vm6, %v1302_v21, 0.0  ;;  %v1315_v45 = vsel %vm1267_vm6, %v1303_v0, 0.0  ;;  %v1317_v26 = vsel %vm1267_vm6, %v1304_v24, 0.0 }
 0x145   : > { %v1319_v29 = vsel %vm1267_vm6, %v1305_v43, 0.0 }
 0x146   : > { %v1310_v55 = vadd.f32 %v1309_v23, %v1308_v6 }
 0x148   : > { %v1312_v22 = vadd.f32 %v1311_v13, %v1310_v55 }
 0x14a   : > { %v1314_v14 = vadd.f32 %v1313_v25, %v1312_v22 }
 0x14c   : > { %v1316_v40 = vadd.f32 %v1315_v45, %v1314_v14 }
 0x14e   : > { %v1318_v27 = vadd.f32 %v1317_v26, %v1316_v40 }
 0x150   : > { %v1320_v49 = vadd.f32 %v1319_v29, %v1318_v27 }
 0x152   : > { %v1321_v30 = vrot.slane %v1320_v49, 4 }
 0x154   : > { %v1322_v51 = vadd.f32 %v1321_v30, %v1320_v49 }
 0x156   : > { %v1323_v15 = vrot.slane %v1322_v51, 2 }
 0x158   : > { %v1324_v31 = vadd.f32 %v1323_v15, %v1322_v51 }
 0x15a   : > { %v1325_v47 = vrot.slane %v1324_v31, 1 }
 0x15c   : > { %v1326_v54 = vadd.f32 %v1325_v47, %v1324_v31 }
 0x15e   : > { %1329 = vst.msk [vmem:[%s2210_s8 + $0x1] sm:$0x1] %vm1327_vm7, %v1326_v54 }
 0x15f   : > { %1757 = shalt.err (!%p1754_p3)
}
 0x160   : > { %1691 = dma.vmem_to_hbm [thread:$0]  (%p1852_p5), %s1352_s19, 32, %s1354_s20, %s1336_s24  }
 0x161 PF: > { %p1697_p4 = scmp.ge.s32.totalorder %s1792_s15, 2  ;;  %s1373_s5 = sand.u32 1, %s1780_s12  }
 0x162   : > { %s1374_s6 = scalar_lea.sflag [#allocation3], %s1373_s5 }
 0x163   : > { %p1694_p7 = pnand %p1697_p4, %p1856_p6 }
 0x165   : > { %p1695_p8 = pneg %p1694_p7 }
 0x167   : > { %1775 = dma.done.wait (%p1695_p8), %s1374_s6, 32  }
 0x168   : > { %1777 = vsyncadd (%p1695_p8), %s1374_s6, 4294967264  ;;  %p14_p9 = scmp.ge.s32.totalorder %s1839_s18, 4   ;;  %s2271_s12 = smov %s1784_s13 }
 0x169   : > { %s2272_s13 = smov %s1788_s14  ;;  %s2273_s14 = smov %s1850_s21 }
 0x16a   : > { %s2274_s15 = smov %s1839_s18  ;;  %16 = sbr.rel (!%p14_p9) target bundleno = 3 (0x3), region = 88 }
 0x16f   :  { %1380 = vsyncpa [#allocation3], 1 }
 0x170   :  { %1382 = vsyncpa [#allocation3 + $0x1], 1 }

</bundles_post_ra>
